<compile_context>
chip_gen: v7x
topology: tpu7x:2x2x1
jax: 0.10.0
libtpu: 0.0.40
codegen_flags: <defaults>
</compile_context>

<pallas_src>
import math

import jax
import jax.numpy as jnp
from jax.experimental import pallas as pl
from jax.experimental.pallas import tpu as pltpu


def _round_up(x, m):
    return ((x + m - 1) // m) * m


# ---------------------------------------------------------------------------
# Kernels
# ---------------------------------------------------------------------------

def _fused_kernel(x1_ref, x2_ref, w_ref, o_ref):
    """Fused path: o[m] = x1[m] @ (W1 @ W2^T) @ x2[m]^T.

    x1_ref: (TM, d1), x2_ref: (TM, d2), w_ref: (d1, d2), o_ref: (1, TM)."""
    p = jnp.dot(x1_ref[...], w_ref[...],
                preferred_element_type=jnp.float32)          # MXU, f32 accumulate
    prod = p * x2_ref[...].astype(jnp.float32)               # VPU elementwise
    s = jnp.sum(prod, axis=-1)                               # XLU cross-lane reduce
    o_ref[...] = s.reshape(1, -1).astype(o_ref.dtype)        # lane-dense (1, TM) store


def _unfused_kernel(x1_ref, x2_ref, w1_ref, w2_ref, o_ref):
    """Unfused path: o[m] = sum((x1[m] @ W1) * (x2[m] @ W2)).

    x1_ref: (TM, d1), x2_ref: (TM, d2), w1_ref: (d1, P), w2_ref: (d2, P),
    o_ref: (1, TM)."""
    p1 = jnp.dot(x1_ref[...], w1_ref[...], preferred_element_type=jnp.float32)
    p2 = jnp.dot(x2_ref[...], w2_ref[...], preferred_element_type=jnp.float32)
    s = jnp.sum(p1 * p2, axis=-1)
    o_ref[...] = s.reshape(1, -1).astype(o_ref.dtype)


# ---------------------------------------------------------------------------
# Tile / VMEM budgeting
# ---------------------------------------------------------------------------

_VMEM_BUDGET_BYTES = 40 << 20    # comfortably under v7x's 64 MiB physical VMEM
_FUSED_W_MAX_BYTES = 4 << 20     # max size of the fused (d1, d2) weight
_TARGET_BLOCK_BYTES = 4 << 20    # ~4 MiB per streamed input block per grid step
_MIN_GRID_STEPS = 4              # keep pipelining / megacore sharding alive


def _choose_tm_and_vmem(M, d1, d2, proj_dim, in_bytes, fused):
    d_max = max(d1, d2, 1)
    tm = _TARGET_BLOCK_BYTES // max(1, d_max * in_bytes)
    tm = max(128, min(8192, int(tm)))
    tm = _round_up(tm, 128)
    # Keep >= a few grid steps when M allows (v7x: shard tiles across both
    # TensorCores; all chips: keep prologue/epilogue DMAs overlapped).
    if M > 128:
        tm = min(tm, _round_up((M + _MIN_GRID_STEPS - 1) // _MIN_GRID_STEPS, 128))
    tm = min(tm, _round_up(M, 128))

    def est(t):
        inputs = 2 * t * (d1 + d2) * in_bytes            # double-buffered x1/x2 tiles
        if fused:
            weight = 2 * d1 * d2 * in_bytes              # conservative (x2 buffers)
            inter = t * d2 * 4                           # (TM, d2) f32 intermediate
        else:
            weight = 2 * (d1 + d2) * proj_dim * in_bytes
            inter = 2 * t * proj_dim * 4                 # two (TM, P) f32 intermediates
        out = 2 * t * 4
        return inputs + weight + inter + out

    while tm > 128 and est(tm) > _VMEM_BUDGET_BYTES:
        tm -= 128

    vmem_limit = int(min(48 << 20, max(32 << 20, est(tm) + (8 << 20))))
    return tm, vmem_limit


# ---------------------------------------------------------------------------
# Wrapper (forward pass of the module)
# ---------------------------------------------------------------------------

def projected_dot_product_similarity(tensor_1, tensor_2, w1, w2=None,
                                     bias=None, activation=None,
                                     compute_dtype=jnp.bfloat16,
                                     fuse=None):
    """tensor_1: (..., d1), tensor_2: (..., d2) with identical leading dims.
    w1: (d1, P); w2: (d2, P) or None for reuse_weight=True.
    Returns (...,) f32 similarity scores; bias/activation are applied to the
    scalar result, exactly as in the PyTorch module."""
    if w2 is None:                       # reuse_weight=True path
        w2 = w1

    lead_shape = tensor_1.shape[:-1]
    d1 = tensor_1.shape[-1]
    d2 = tensor_2.shape[-1]
    proj_dim = w1.shape[-1]
    M = int(math.prod(lead_shape)) if lead_shape else 1

    in_bytes = jnp.dtype(compute_dtype).itemsize

    # Size-gated algebraic fusion: sum_p (x1 W1)_p (x2 W2)_p == x1 (W1 W2^T) x2^T.
    if fuse is None:
        fuse = (d1 * d2 <= (d1 + d2) * proj_dim
                and d1 * d2 * in_bytes <= _FUSED_W_MAX_BYTES)

    x1 = tensor_1.reshape(M, d1).astype(compute_dtype)
    x2 = tensor_2.reshape(M, d2).astype(compute_dtype)

    tm, vmem_limit = _choose_tm_and_vmem(M, d1, d2, proj_dim, in_bytes, fuse)
    grid = (pl.cdiv(M, tm),)

    compiler_params = pltpu.CompilerParams(
        dimension_semantics=("parallel",),          # megacore-shard M tiles (v7x)
        vmem_limit_bytes=vmem_limit,
    )
    out_shape = jax.ShapeDtypeStruct((1, M), jnp.float32)
    x_specs = [
        pl.BlockSpec((tm, d1), lambda i: (i, 0)),
        pl.BlockSpec((tm, d2), lambda i: (i, 0)),
    ]
    out_spec = pl.BlockSpec((1, tm), lambda i: (0, i))   # lane-dense output row

    if fuse:
        w_fused = jnp.dot(w1, w2.T,
                          precision=jax.lax.Precision.HIGHEST).astype(compute_dtype)
        out = pl.pallas_call(
            _fused_kernel,
            out_shape=out_shape,
            grid=grid,
            in_specs=x_specs + [
                pl.BlockSpec((d1, d2), lambda i: (0, 0)),         # VMEM-resident weight
            ],
            out_specs=out_spec,
            compiler_params=compiler_params,
        )(x1, x2, w_fused)
    else:
        out = pl.pallas_call(
            _unfused_kernel,
            out_shape=out_shape,
            grid=grid,
            in_specs=x_specs + [
                pl.BlockSpec((d1, proj_dim), lambda i: (0, 0)),   # VMEM-resident W1
                pl.BlockSpec((d2, proj_dim), lambda i: (0, 0)),   # VMEM-resident W2
            ],
            out_specs=out_spec,
            compiler_params=compiler_params,
        )(x1, x2, w1.astype(compute_dtype), w2.astype(compute_dtype))

    result = out[0, :M].reshape(lead_shape)
    if bias is not None:
        result = result + bias
    if activation is not None:
        result = activation(result)
    return result


def xavier_uniform(key, fan_in, fan_out, dtype=jnp.float32):
    limit = math.sqrt(6.0 / (fan_in + fan_out))
    return jax.random.uniform(key, (fan_in, fan_out), dtype=dtype,
                              minval=-limit, maxval=limit)


if __name__ == "__main__":
    # Module config (reuse_weight=False, bias=False, activation=None).
    batch, seq = 2, 8
    tensor_1_dim, tensor_2_dim, projected_dim = 32, 32, 64

    key = jax.random.PRNGKey(0)
    k1, k2, k3, k4 = jax.random.split(key, 4)

    # Deterministic parameter init (xavier_uniform, as in reset_parameters()).
    w1 = xavier_uniform(k1, tensor_1_dim, projected_dim)
    w2 = xavier_uniform(k2, tensor_2_dim, projected_dim)

    tensor_1 = jax.random.normal(k3, (batch, seq, tensor_1_dim), dtype=jnp.float32)
    tensor_2 = jax.random.normal(k4, (batch, seq, tensor_2_dim), dtype=jnp.float32)

    # Default path (auto -> fused weight, bf16 streaming, f32 accumulation).
    result = projected_dot_product_similarity(tensor_1, tensor_2, w1, w2)
    result = jax.block_until_ready(result)

    # Also exercise the unfused kernel with f32 streaming (large-feature-dim path).
    result_unfused = projected_dot_product_similarity(
        tensor_1, tensor_2, w1, w2, compute_dtype=jnp.float32, fuse=False)
    result_unfused = jax.block_until_ready(result_unfused)

    # Reference (pure JAX, unfused, f32 HIGHEST matmuls).
    hp = jax.lax.Precision.HIGHEST
    ref = jnp.sum(jnp.matmul(tensor_1, w1, precision=hp)
                  * jnp.matmul(tensor_2, w2, precision=hp), axis=-1)

    assert result.shape == (batch, seq), result.shape
    assert result_unfused.shape == (batch, seq), result_unfused.shape
    # bf16-streamed path: bf16-appropriate tolerance.
    assert jnp.allclose(result, ref, atol=5e-2, rtol=5e-2), "bf16 path mismatch"
    # f32-streamed unfused path: tighter tolerance.
    assert jnp.allclose(result_unfused, ref, atol=1e-2, rtol=1e-2), "f32 path mismatch"

    print("KERNEL_OK")
</pallas_src>

<mosaic_0001>
module attributes {stable_mosaic.version = 11 : i64} {
  func.func @_fused_kernel(%arg0: i32, %arg1: memref<128x32xbf16, #tpu.memory_space<vmem>>, %arg2: memref<128x32xbf16, #tpu.memory_space<vmem>>, %arg3: memref<32x32xbf16, #tpu.memory_space<vmem>>, %arg4: memref<1x128xf32, #tpu.memory_space<vmem>>) attributes {dimension_semantics = [#tpu.dimension_semantics<parallel>], iteration_bounds = array<i64: 1>, scalar_prefetch = 0 : i64, scratch_operands = 0 : i64, tpu.core_type = #tpu.core_type<tc>, window_params = [{transform_indices = @transform_0, window_bounds = array<i64: 128, 32>}, {transform_indices = @transform_1, window_bounds = array<i64: 128, 32>}, {pipeline_mode = #tpu.pipeline_mode<synchronous>, transform_indices = @transform_2, window_bounds = array<i64: 32, 32>}, {transform_indices = @transform_3, window_bounds = array<i64: 1, 128>}]} {
    %c0 = arith.constant 0 : index
    %c0_0 = arith.constant 0 : index
    %0 = vector.load %arg1[%c0, %c0_0] : memref<128x32xbf16, #tpu.memory_space<vmem>>, vector<128x32xbf16>
    %c0_1 = arith.constant 0 : index
    %c0_2 = arith.constant 0 : index
    %1 = vector.load %arg3[%c0_1, %c0_2] : memref<32x32xbf16, #tpu.memory_space<vmem>>, vector<32x32xbf16>
    %cst = arith.constant dense<0.000000e+00> : vector<128x32xf32>
    %2 = tpu.matmul %0, %1, %cst {dimension_numbers = #tpu.dot_dimension_numbers<[1], [0], [0], [1], [0, 0, 1, 1], [], []>} : vector<128x32xbf16>, vector<32x32xbf16>, vector<128x32xf32> -> vector<128x32xf32>
    %c0_3 = arith.constant 0 : index
    %c0_4 = arith.constant 0 : index
    %3 = vector.load %arg2[%c0_3, %c0_4] : memref<128x32xbf16, #tpu.memory_space<vmem>>, vector<128x32xbf16>
    %4 = arith.extf %3 : vector<128x32xbf16> to vector<128x32xf32>
    %5 = arith.mulf %2, %4 : vector<128x32xf32>
    %cst_5 = arith.constant dense<0.000000e+00> : vector<128xf32>
    %6 = vector.multi_reduction <add>, %5, %cst_5 [1] : vector<128x32xf32> to vector<128xf32>
    %7 = vector.shape_cast %6 : vector<128xf32> to vector<1x128xf32>
    %c0_6 = arith.constant 0 : index
    %c0_7 = arith.constant 0 : index
    %8 = vector.load %arg4[%c0_6, %c0_7] : memref<1x128xf32, #tpu.memory_space<vmem>>, vector<1x128xf32>
    tpu.vector_store %arg4[%c0_6, %c0_7], %7 {strides = array<i32>} : memref<1x128xf32, #tpu.memory_space<vmem>>, vector<1x128xf32>,
    return
  }
  func.func @transform_0(%arg0: i32) -> (i32, i32) {
    %c0_i32 = arith.constant 0 : i32
    %c0_i32_0 = arith.constant 0 : i32
    return %arg0, %c0_i32 : i32, i32
  }
  func.func @transform_1(%arg0: i32) -> (i32, i32) {
    %c0_i32 = arith.constant 0 : i32
    %c0_i32_0 = arith.constant 0 : i32
    return %arg0, %c0_i32 : i32, i32
  }
  func.func @transform_2(%arg0: i32) -> (i32, i32) {
    %c0_i32 = arith.constant 0 : i32
    %c0_i32_0 = arith.constant 0 : i32
    %c0_i32_1 = arith.constant 0 : i32
    return %c0_i32, %c0_i32_0 : i32, i32
  }
  func.func @transform_3(%arg0: i32) -> (i32, i32) {
    %c0_i32 = arith.constant 0 : i32
    %c0_i32_0 = arith.constant 0 : i32
    return %c0_i32, %arg0 : i32, i32
  }
}

</mosaic_0001>

<bundles_post_ra>
// kernel: tpu_custom_call.1
= control target key start
LH: loop header
LB: loop body
LE: loop exit
PB: predicated region body
PF: predicated region fallthrough
CT: control target
= control target key end

     0   :  { %8 = vsyncpa [#allocation3], 0  ;;  %s844_s0 = inlined_call_operand.hbm [shape: bf16[16,32], index: 0, kind: input, shape index: {}]   ;;  %s845_s1 = inlined_call_operand.hbm [shape: bf16[16,32], index: 1, kind: input, shape index: {}]   ;;  %s846_s2 = inlined_call_operand.hbm [shape: bf16[32,32], index: 2, kind: input, shape index: {}]   ;;  %s847_s3 = inlined_call_operand.hbm [shape: f32[1,16], index: 3, kind: output, shape index: {}]  }
   0x1   :  { %9 = vsyncpa [#allocation6], 0 }
   0x2   :  { %10 = vsyncpa [#allocation4], 0 }
   0x3   :  { %15 = vsyncadd [#allocation3], 896  ;;  %s693_s12 = smov [#allocation2]   ;;  %s599_s16 = scalar_lea.hbm %s844_s0, 128 }
   0x4   :  { %s16_s13 = sshll.u32 %s693_s12, 4  ;;  %p600_p0 = scmp.ne.s32.totalorder %s844_s0, %s599_s16  ;;  %s17_s13 = int_to_ptr.vmem [resolvable:$true] %s16_s13 }
   0x5   :  { %p603_p1 = scmp.lt.u32.totalorder %s599_s16, %s844_s0 }
   0x7   :  { %p605_p2 = pnand %p603_p1, %p600_p0 }
   0x9   :  { %608 = shalt.err (!%p605_p2)
}
   0xa   :  { %s609_s21 = scalar_lea.vmem %s17_s13, 128  ;;  %s613_s22 = scalar_lea.vmem %s17_s13, 1024 }
   0xb   :  { %p610_p3 = scmp.ne.s32.totalorder %s17_s13, %s609_s21  ;;  %p614_p4 = scmp.lt.s32.totalorder %s17_s13, %s17_s13 }
   0xc   :  { %p615_p5 = scmp.lt.s32.totalorder %s613_s22, %s609_s21 }
   0xe   :  { %p616_p6 = por %p615_p5, %p614_p4 }
  0x10   :  { %p617_p7 = pnand %p616_p6, %p610_p3 }
  0x12   :  { %620 = shalt.err (!%p617_p7)
}
  0x13   :  { %s694_s23 = smov 64   ;;  %s695_s24 = smov 4  }
  0x14   :  { %22 = dma.hbm_to_vmem [thread:$0]  %s844_s0, 128, %s17_s13, [#allocation3], %s694_s23, %s694_s23, %s695_s24  }
  0x15   :  { %27 = vsyncadd [#allocation6], 896  ;;  %s696_s27 = smov [#allocation5]   ;;  %s697_s29 = smov [#allocation7]  }
  0x16   :  { %s28_s28 = sshll.u32 %s696_s27, 4  ;;  %s40_s30 = sshll.u32 %s697_s29, 4  ;;  %s29_s28 = int_to_ptr.vmem [resolvable:$true] %s28_s28  ;;  %s734_s30 = int_to_ptr.vmem [resolvable:$true] %s40_s30 }
  0x17   :  { %s621_s6 = scalar_lea.hbm %s845_s1, 128 }
  0x18   :  { %p622_p8 = scmp.ne.s32.totalorder %s845_s1, %s621_s6  ;;  %p625_p9 = scmp.lt.u32.totalorder %s621_s6, %s845_s1 }
  0x1a   :  { %p627_p10 = pnand %p625_p9, %p622_p8 }
  0x1c   :  { %630 = shalt.err (!%p627_p10)
}
  0x1d   :  { %s631_s0 = scalar_lea.vmem %s29_s28, 128  ;;  %s635_s11 = scalar_lea.vmem %s29_s28, 1024 }
  0x1e   :  { %p632_p11 = scmp.ne.s32.totalorder %s29_s28, %s631_s0  ;;  %p636_p12 = scmp.lt.s32.totalorder %s29_s28, %s29_s28 }
  0x1f   :  { %p637_p13 = scmp.lt.s32.totalorder %s635_s11, %s631_s0 }
  0x21   :  { %p638_p0 = por %p637_p13, %p636_p12 }
  0x23   :  { %p639_p1 = pnand %p638_p0, %p632_p11 }
  0x25   :  { %642 = shalt.err (!%p639_p1)
}
  0x26   :  { %34 = dma.hbm_to_vmem [thread:$0]  %s845_s1, 128, %s29_s28, [#allocation6], %s694_s23, %s694_s23, %s695_s24  }
  0x27   :  { %s643_s16 = scalar_lea.hbm %s846_s2, 256 }
  0x28   :  { %p644_p2 = scmp.ne.s32.totalorder %s846_s2, %s643_s16  ;;  %p647_p3 = scmp.lt.u32.totalorder %s643_s16, %s846_s2 }
  0x2a   :  { %p649_p4 = pnand %p647_p3, %p644_p2 }
  0x2c   :  { %652 = shalt.err (!%p649_p4)
}
  0x2d   :  { %s653_s21 = scalar_lea.vmem %s734_s30, 256  ;;  %p658_p6 = scmp.lt.s32.totalorder %s734_s30, %s734_s30 }
  0x2e   :  { %p654_p5 = scmp.ne.s32.totalorder %s734_s30, %s653_s21  ;;  %p659_p7 = scmp.lt.s32.totalorder %s653_s21, %s653_s21 }
  0x30   :  { %p660_p8 = por %p659_p7, %p658_p6 }
  0x32   :  { %p661_p9 = pnand %p660_p8, %p654_p5 }
  0x34   :  { %664 = shalt.err (!%p661_p9)
}
  0x35   :  { %46 = dma.hbm_to_vmem [thread:$0]  %s846_s2, 256, %s734_s30, [#allocation6], %s694_s23, %s694_s23, %s695_s24  }
  0x36   :  { %687 = dma.done.wait [#allocation3], 1024  }
  0x37   :  { %688 = vsyncadd [#allocation3], 4294966272 }
  0x38   :  { %689 = dma.done.wait [#allocation6], 1280  }
  0x39   :  { %690 = vsyncadd [#allocation6], 4294966016  ;;  %v589_v0 = vld [vmem:[#allocation7] sm:$0xff]   ;;  %v590_v1 = vld [vmem:[#allocation7 + $0x8] sm:$0xff]   ;;  %vm129_vm0 = vcmask 261120   ;;  %vm374_vm1 = vcmask 130112  }
  0x3a   :  { %559 = vmatprep.subr.bf16.mxu0 %v589_v0  ;;  %579 = vmatprep.subr.bf16.mxu1 %v589_v0  ;;  %v591_v2 = vld [vmem:[#allocation2] sm:$0xff]   ;;  %v592_v4 = vld [vmem:[#allocation2 + $0x8] sm:$0xff]   ;;  %v595_v6 = vld [vmem:[#allocation2 + $0x10] sm:$0xff]   ;;  %vm381_vm2 = vcmask 195712   ;;  %vm388_vm3 = vcmask 261312   ;;  %vm395_vm4 = vcmask 326912  }
  0x3b   :  { %560 = vmatpush3.bf16.msra.mxu0 %v589_v0  ;;  %581 = vmatpush3.bf16.msra.mxu1 %v589_v0  ;;  %v593_v3 = vld [vmem:[#allocation2 + $0x20] sm:$0xff]   ;;  %v594_v5 = vld [vmem:[#allocation2 + $0x28] sm:$0xff]   ;;  %v597_v7 = vld [vmem:[#allocation2 + $0x30] sm:$0xff]   ;;  %vm402_vm5 = vcmask 392512   ;;  %vm409_vm6 = vcmask 458112   ;;  %vm416_vm7 = vcmask 523712  }
  0x3c   :  { %561 = vmatprep.subr.bf16.mxu0 %v590_v1  ;;  %580 = vmatprep.subr.bf16.mxu1 %v590_v1  ;;  %v596_v8 = vld [vmem:[#allocation2 + $0x18] sm:$0xff]   ;;  %v542_v10 = vld [vmem:[#allocation5 + $0x8] sm:$0xff]   ;;  %v511_v11 = vld [vmem:[#allocation5] sm:$0xff]   ;;  %vm423_vm8 = vcmask 589312   ;;  %vm430_vm9 = vcmask 654912   ;;  %vm437_vm10 = vcmask 720512  }
  0x3d   :  { %563 = vmatprep.mubr.msk.bf16.mxu0 %vm129_vm0, %v591_v2  ;;  %571 = vmatprep.mubr.msk.bf16.mxu1 %vm129_vm0, %v593_v3  ;;  %v598_v9 = vld [vmem:[#allocation2 + $0x38] sm:$0xff]   ;;  %v545_v12 = vld [vmem:[#allocation5 + $0x20] sm:$0xff]   ;;  %v516_v13 = vunpack.c.l.bf16 %v542_v10  ;;  %v512_v14 = vunpack.c.l.bf16 %v511_v11  ;;  %v517_v16 = vunpack.c.h.bf16 %v542_v10  ;;  %v513_v32 = vunpack.c.h.bf16 %v511_v11  ;;  %v543_v41 = vld [vmem:[#allocation5 + $0x10] sm:$0xff]   ;;  %s698_s2 = smov [#allocation8]  }
  0x3e   :  { %v528_v15 = vunpack.c.l.bf16 %v545_v12  ;;  %v529_v29 = vunpack.c.h.bf16 %v545_v12  ;;  %v544_v31 = vld [vmem:[#allocation5 + $0x18] sm:$0xff]   ;;  %v521_v51 = vunpack.c.h.bf16 %v543_v41  ;;  %v546_v53 = vld [vmem:[#allocation5 + $0x28] sm:$0xff]   ;;  %v520_v54 = vunpack.c.l.bf16 %v543_v41  ;;  %v547_v58 = vld [vmem:[#allocation5 + $0x30] sm:$0xff]   ;;  %s482_s23 = sshll.u32 %s698_s2, 4  ;;  %s483_s23 = int_to_ptr.vmem [resolvable:$true] %s482_s23 }
  0x3f   :  { %562 = vmatpush3.bf16.msra.mxu0 %v590_v1  ;;  %582 = vmatpush3.bf16.msra.mxu1 %v590_v1  ;;  %v524_v35 = vunpack.c.l.bf16 %v544_v31  ;;  %v525_v38 = vunpack.c.h.bf16 %v544_v31  ;;  %v533_v59 = vunpack.c.h.bf16 %v546_v53  ;;  %v532_v61 = vunpack.c.l.bf16 %v546_v53  ;;  %v548_v3 = vld [vmem:[#allocation5 + $0x38] sm:$0xff]   ;;  %s665_s24 = scalar_lea.vmem %s483_s23, 16  ;;  %s669_s25 = scalar_lea.vmem %s483_s23, 32 }
  0x40   :  { %v537_v63 = vunpack.c.h.bf16 %v547_v58  ;;  %vm444_vm11 = vcmask 786112   ;;  %vm451_vm12 = vcmask 851712   ;;  %vm458_vm13 = vcmask 917312   ;;  %p666_p10 = scmp.ne.s32.totalorder %s483_s23, %s665_s24  ;;  %p670_p11 = scmp.lt.s32.totalorder %s483_s23, %s483_s23 }
  0x41   :  { %vm465_vm14 = vcmask 982912   ;;  %vm472_vm15 = vcmask 1048512   ;;  %p671_p12 = scmp.lt.s32.totalorder %s669_s25, %s665_s24 }
  0x42   :  { %564 = vmatmul.mubr.msk.bf16.vlgmr.msra.gmra.mrb[0].mxu0 %vm129_vm0, %v592_v4  ;;  %572 = vmatmul.mubr.msk.bf16.vlgmr.msra.gmra.mrb[0].mxu1 %vm129_vm0, %v594_v5  ;;  %v536_v4 = vunpack.c.l.bf16 %v547_v58 }
  0x43   :  { %567 = vmatprep.mubr.msk.bf16.mxu0 %vm129_vm0, %v595_v6  ;;  %575 = vmatprep.mubr.msk.bf16.mxu1 %vm129_vm0, %v597_v7  ;;  %v541_v7 = vunpack.c.h.bf16 %v548_v3  ;;  %p672_p13 = por %p671_p12, %p670_p11 }
  0x45   :  { %p673_p0 = pnand %p672_p13, %p666_p10 }
  0x4a   :  { %568 = vmatmul.mubr.msk.bf16.gmra.mrb[4].mxu0 %vm129_vm0, %v596_v8  ;;  %576 = vmatmul.mubr.msk.bf16.gmra.mrb[4].mxu1 %vm129_vm0, %v598_v9  ;;  %v540_v9 = vunpack.c.l.bf16 %v548_v3 }
 0x115   :  { %v565_v17 = vpop.f32.mrb[0].mxu0  ;;  %v573_v18 = vpop.f32.mrb[0].mxu1 }
 0x116   :  { %v285_v19 = vmul.f32 %v565_v17, %v516_v13  ;;  %v188_v20 = vpop.f32.mrb[1].mxu0  ;;  %v220_v21 = vpop.f32.mrb[1].mxu1  ;;  %v293_v2 = vmul.f32 %v573_v18, %v532_v61  ;;  %v363_v18 = vlaneseq }
 0x117   :  { %v283_v22 = vmul.f32 %v512_v14, %v188_v20  ;;  %v566_v23 = vpop.f32.mrb[2].mxu0  ;;  %v291_v24 = vmul.f32 %v528_v15, %v220_v21  ;;  %v574_v25 = vpop.f32.mrb[2].mxu1 }
 0x118   :  { %v286_v26 = vmul.f32 %v566_v23, %v517_v16  ;;  %v191_v27 = vpop.f32.mrb[3].mxu0  ;;  %v223_v28 = vpop.f32.mrb[3].mxu1  ;;  %v305_v30 = vsel %vm129_vm0, %v285_v19, 0.0  ;;  %v294_v0 = vmul.f32 %v574_v25, %v533_v59  ;;  %v329_v11 = vsel %vm129_vm0, %v293_v2, 0.0 }
 0x119   :  { %306 = vadd.xlane.f32.xlu1 %v305_v30  ;;  %v299_v33 = vsel %vm129_vm0, %v283_v22, 0.0  ;;  %v323_v34 = vsel %vm129_vm0, %v291_v24, 0.0  ;;  %v292_v36 = vmul.f32 %v529_v29, %v223_v28  ;;  %v284_v39 = vmul.f32 %v513_v32, %v191_v27 }
 0x11a   :  { %300 = vadd.xlane.f32.xlu0 %v299_v33  ;;  %v308_v37 = vsel %vm129_vm0, %v286_v26, 0.0  ;;  %v332_v8 = vsel %vm129_vm0, %v294_v0, 0.0  ;;  %v795_v19 = vand.u32 127, %v363_v18  ;;  %v798_v23 = vshrl.u32 %v363_v18, 7 }
 0x11b   :  { %v326_v49 = vsel %vm129_vm0, %v292_v36, 0.0  ;;  %v302_v55 = vsel %vm129_vm0, %v284_v39, 0.0 }
 0x11c   :  { %v369_v22 = vadd.s32 4294967288, %v795_v19  ;;  %v376_v26 = vadd.s32 4294967280, %v795_v19  ;;  %v367_v28 = vsub.s32 %v795_v19, %v798_v23  ;;  %v383_v29 = vadd.s32 4294967272, %v795_v19 }
 0x11d   :  { %309 = vadd.xlane.f32.xlu1 %v308_v37  ;;  %v569_v40 = vpop.f32.mrb[4].mxu0  ;;  %v577_v42 = vpop.f32.mrb[4].mxu1  ;;  %v397_v36 = vadd.s32 4294967256, %v795_v19  ;;  %v425_v41 = vadd.s32 4294967224, %v795_v19  ;;  %v446_v59 = vadd.s32 4294967200, %v795_v19  ;;  %v453_v3 = vadd.s32 4294967192, %v795_v19 }
 0x11e   :  { %324 = vadd.xlane.f32.xlu0 %v323_v34  ;;  %v204_v43 = vpop.f32.mrb[5].mxu0  ;;  %v236_v44 = vpop.f32.mrb[5].mxu1  ;;  %v289_v45 = vmul.f32 %v569_v40, %v524_v35  ;;  %v297_v14 = vmul.f32 %v577_v42, %v540_v9  ;;  %v372_v27 = vsub.s32 %v369_v22, %v798_v23  ;;  %v379_v32 = vsub.s32 %v376_v26, %v798_v23 }
 0x11f   :  { %v570_v46 = vpop.f32.mrb[6].mxu0  ;;  %v578_v47 = vpop.f32.mrb[6].mxu1  ;;  %v287_v62 = vmul.f32 %v520_v54, %v204_v43  ;;  %v295_v10 = vmul.f32 %v536_v4, %v236_v44  ;;  %v390_v34 = vadd.s32 4294967264, %v795_v19  ;;  %v386_v37 = vsub.s32 %v383_v29, %v798_v23 }
 0x120   :  { %v290_v48 = vmul.f32 %v570_v46, %v525_v38  ;;  %v207_v50 = vpop.f32.mrb[7].mxu0  ;;  %v239_v52 = vpop.f32.mrb[7].mxu1  ;;  %v317_v57 = vsel %vm129_vm0, %v289_v45, 0.0  ;;  %v298_v13 = vmul.f32 %v578_v47, %v541_v7  ;;  %v341_v17 = vsel %vm129_vm0, %v297_v14, 0.0 }
 0x121   :  { %327 = vadd.xlane.f32.xlu1 %v326_v49  ;;  %v288_v60 = vmul.f32 %v521_v51, %v207_v50  ;;  %v311_v5 = vsel %vm129_vm0, %v287_v62, 0.0  ;;  %v296_v6 = vmul.f32 %v537_v63, %v239_v52  ;;  %v335_v15 = vsel %vm129_vm0, %v295_v10, 0.0 }
 0x122   :  { %303 = vadd.xlane.f32.xlu0 %v302_v55  ;;  %v320_v56 = vsel %vm129_vm0, %v290_v48, 0.0  ;;  %v344_v16 = vsel %vm129_vm0, %v298_v13, 0.0  ;;  %v418_v38 = vadd.s32 4294967232, %v795_v19  ;;  %v404_v40 = vadd.s32 4294967248, %v795_v19 }
 0x123   :  { %v314_v1 = vsel %vm129_vm0, %v288_v60, 0.0  ;;  %v338_v12 = vsel %vm129_vm0, %v296_v6, 0.0  ;;  %v411_v43 = vadd.s32 4294967240, %v795_v19  ;;  %v393_v46 = vsub.s32 %v390_v34, %v798_v23 }
 0x124   :  { %v400_v47 = vsub.s32 %v397_v36, %v798_v23  ;;  %v439_v48 = vadd.s32 4294967208, %v795_v19  ;;  %v432_v49 = vadd.s32 4294967216, %v795_v19  ;;  %v421_v50 = vsub.s32 %v418_v38, %v798_v23 }
 0x125   :  { %321 = vadd.xlane.f32.xlu1 %v320_v56  ;;  %v407_v52 = vsub.s32 %v404_v40, %v798_v23  ;;  %v428_v55 = vsub.s32 %v425_v41, %v798_v23  ;;  %v414_v56 = vsub.s32 %v411_v43, %v798_v23  ;;  %v449_v9 = vsub.s32 %v446_v59, %v798_v23 }
 0x126   :  { %318 = vadd.xlane.f32.xlu0 %v317_v57  ;;  %v442_v62 = vsub.s32 %v439_v48, %v798_v23  ;;  %v435_v63 = vsub.s32 %v432_v49, %v798_v23  ;;  %v460_v10 = vadd.s32 4294967184, %v795_v19  ;;  %v467_v13 = vadd.s32 4294967176, %v795_v19 }
 0x129   :  { %315 = vadd.xlane.f32.xlu1 %v314_v1 }
 0x12a   :  { %312 = vadd.xlane.f32.xlu0 %v311_v5 }
 0x12d   :  { %333 = vadd.xlane.f32.xlu1 %v332_v8 }
 0x12e   :  { %330 = vadd.xlane.f32.xlu0 %v329_v11 }
 0x131   :  { %339 = vadd.xlane.f32.xlu1 %v338_v12 }
 0x132   :  { %336 = vadd.xlane.f32.xlu0 %v335_v15 }
 0x135   :  { %345 = vadd.xlane.f32.xlu1 %v344_v16 }
 0x136   :  { %342 = vadd.xlane.f32.xlu0 %v341_v17 }
 0x1a6   :  { %v307_v20 = vpop.xlane.xlu1 %306 }
 0x1a7   :  { %v301_v21 = vpop.xlane.xlu0 %300  ;;  %v380_v45 = vrot.slane %v307_v20, %v379_v32  ;;  %v456_v20 = vsub.s32 %v453_v3, %v798_v23 }
 0x1a8   :  { %v368_v35 = vrot.slane %v301_v21, %v367_v28 }
 0x1aa   :  { %v310_v24 = vpop.xlane.xlu1 %309 }
 0x1ab   :  { %v325_v25 = vpop.xlane.xlu0 %324  ;;  %v387_v54 = vrot.slane %v310_v24, %v386_v37 }
 0x1ac   :  { %v422_v7 = vrot.slane %v325_v25, %v421_v50  ;;  %v463_v25 = vsub.s32 %v460_v10, %v798_v23 }
 0x1ae   :  { %v328_v30 = vpop.xlane.xlu1 %327 }
 0x1af   :  { %v304_v31 = vpop.xlane.xlu0 %303  ;;  %v429_v11 = vrot.slane %v328_v30, %v428_v55 }
 0x1b0   :  { %v373_v33 = vrot.slane %v304_v31, %v372_v27  ;;  %v470_v27 = vsub.s32 %v467_v13, %v798_v23 }
 0x1b2   :  { %v322_v39 = vpop.xlane.xlu1 %321  ;;  %v375_v42 = vsel %vm374_vm1, %v373_v33, %v368_v35 }
 0x1b3   :  { %v319_v44 = vpop.xlane.xlu0 %318  ;;  %v382_v51 = vsel %vm381_vm2, %v380_v45, %v375_v42  ;;  %v415_v4 = vrot.slane %v322_v39, %v414_v56 }
 0x1b4   :  { %v389_v61 = vsel %vm388_vm3, %v387_v54, %v382_v51  ;;  %v408_v0 = vrot.slane %v319_v44, %v407_v52 }
 0x1b6   :  { %v316_v53 = vpop.xlane.xlu1 %315 }
 0x1b7   :  { %v313_v57 = vpop.xlane.xlu0 %312  ;;  %v401_v60 = vrot.slane %v316_v53, %v400_v47 }
 0x1b8   :  { %v394_v58 = vrot.slane %v313_v57, %v393_v46 }
 0x1ba   :  { %v396_v1 = vsel %vm395_vm4, %v394_v58, %v389_v61  ;;  %v334_v2 = vpop.xlane.xlu1 %333 }
 0x1bb   :  { %v403_v5 = vsel %vm402_vm5, %v401_v60, %v396_v1  ;;  %v331_v6 = vpop.xlane.xlu0 %330  ;;  %v443_v17 = vrot.slane %v334_v2, %v442_v62 }
 0x1bc   :  { %v410_v8 = vsel %vm409_vm6, %v408_v0, %v403_v5  ;;  %v436_v15 = vrot.slane %v331_v6, %v435_v63 }
 0x1bd   :  { %v417_v12 = vsel %vm416_vm7, %v415_v4, %v410_v8 }
 0x1be   :  { %v424_v14 = vsel %vm423_vm8, %v422_v7, %v417_v12  ;;  %v340_v16 = vpop.xlane.xlu1 %339 }
 0x1bf   :  { %v431_v18 = vsel %vm430_vm9, %v429_v11, %v424_v14  ;;  %v337_v21 = vpop.xlane.xlu0 %336  ;;  %v457_v19 = vrot.slane %v340_v16, %v456_v20 }
 0x1c0   :  { %v438_v22 = vsel %vm437_vm10, %v436_v15, %v431_v18  ;;  %v450_v24 = vrot.slane %v337_v21, %v449_v9 }
 0x1c1   :  { %v445_v26 = vsel %vm444_vm11, %v443_v17, %v438_v22 }
 0x1c2   :  { %v452_v28 = vsel %vm451_vm12, %v450_v24, %v445_v26  ;;  %v346_v29 = vpop.xlane.xlu1 %345 }
 0x1c3   :  { %v343_v30 = vpop.xlane.xlu0 %342  ;;  %v471_v32 = vrot.slane %v346_v29, %v470_v27  ;;  %v459_v33 = vsel %vm458_vm13, %v457_v19, %v452_v28 }
 0x1c4   :  { %v464_v31 = vrot.slane %v343_v30, %v463_v25 }
 0x1c6   :  { %v466_v34 = vsel %vm465_vm14, %v464_v31, %v459_v33 }
 0x1c7   :  { %v473_v35 = vsel %vm472_vm15, %v471_v32, %v466_v34 }
 0x1c8   :  { %475 = vst [vmem:[#allocation8] sm:$0x1] %v473_v35 }
 0x1c9   :  { %676 = shalt.err (!%p673_p0)
}
 0x1ca   :  { %s677_s28 = scalar_lea.hbm %s847_s3, 16 }
 0x1cb   :  { %p678_p1 = scmp.ne.s32.totalorder %s847_s3, %s677_s28  ;;  %p681_p2 = scmp.lt.u32.totalorder %s677_s28, %s847_s3 }
 0x1cd   :  { %p683_p3 = pnand %p681_p2, %p678_p1 }
 0x1cf   :  { %686 = shalt.err (!%p683_p3)
}
 0x1d0   :  { %485 = dma.vmem_to_hbm [thread:$0]  %s483_s23, 16, %s847_s3, [#allocation4]  }
 0x1d1   :  { %691 = dma.done.wait [#allocation4], 16  }
 0x1d2   :  { %692 = vsyncadd [#allocation4], 4294967280 }
 0x1d3   :  { %489 = vsyncpa [#allocation3], 1 }
 0x1d4   :  { %490 = vsyncpa [#allocation6], 1 }
 0x1d5   :  { %491 = vsyncpa [#allocation4], 1 }

</bundles_post_ra>
